<compile_context>
chip_gen: v7x
topology: tpu7x:2x2x1
jax: 0.10.0
libtpu: 0.0.40
codegen_flags: <defaults>
</compile_context>

<pallas_src>
import functools

import jax
import jax.numpy as jnp
from jax.experimental import pallas as pl
from jax.experimental.pallas import tpu as pltpu


def _cdiv(a, b):
    return -(-a // b)


def _round_up(x, m):
    return _cdiv(x, m) * m


def _sublane(dtype):
    """Minimum second-to-last block dim for a dtype (packed-tile constraint)."""
    itemsize = jnp.dtype(dtype).itemsize
    if itemsize >= 4:
        return 8
    if itemsize == 2:
        return 16
    return 32


def _default_vmem_limit_bytes():
    """Per-generation scoped-VMEM limit (v7x has half the VMEM of v5e/v6e)."""
    try:
        kind = jax.devices()[0].device_kind.lower()
    except Exception:  # pragma: no cover - defensive
        kind = ""
    if "v7" in kind:
        return 48 * 1024 * 1024   # v7x: 64 MiB physical per TensorCore
    return 96 * 1024 * 1024       # v5e / v6e: 128 MiB physical


def _pick_tile(total, pref, multiple):
    """Tile size (multiple of `multiple`, <= ~pref) minimizing padding of `total`."""
    total_r = _round_up(total, multiple)
    n_tiles = _cdiv(total_r, max(pref, multiple))
    tile = _round_up(_cdiv(total_r, n_tiles), multiple)
    return tile, n_tiles * tile


def _matmul_kernel(*refs, has_bias, use_scratch):
    """One (tm, tn) output tile; K (= C_in) reduction is grid axis 2.

    Ref order: x, w, [bias], out, [acc scratch].
    x_ref: (tm, tk), w_ref: (tk, tn) -- weight already in (C_in, C_out) layout,
    so the contraction is a plain NN matmul (pure MXU work, no XLU transpose).
    """
    x_ref, w_ref = refs[0], refs[1]
    idx = 2
    b_ref = None
    if has_bias:
        b_ref = refs[idx]
        idx += 1
    o_ref = refs[idx]
    idx += 1
    # f32 output: accumulate straight into the resident output block (no scratch,
    # no final copy).  Narrow output: accumulate in an f32 VMEM scratch.
    acc_ref = refs[idx] if use_scratch else o_ref

    k = pl.program_id(2)

    @pl.when(k == 0)
    def _():
        acc_ref[...] = jnp.zeros_like(acc_ref)

    acc_ref[...] += jnp.dot(
        x_ref[...], w_ref[...], preferred_element_type=jnp.float32
    )

    if has_bias or use_scratch:
        @pl.when(k == pl.num_programs(2) - 1)
        def _():
            out = acc_ref[...]
            if has_bias:
                out = out + b_ref[...]   # b_ref is (1, tn) f32: broadcasts over rows
            o_ref[...] = out.astype(o_ref.dtype)


def conv1x1(x, weight, bias=None, *, compute_dtype=jnp.bfloat16,
            tm_pref=512, tn_pref=512, tk_pref=1024, vmem_limit_bytes=None):
    """Equivalent of Conv(in_channels, out_channels, bias).forward(x).

    x:       (N, C_in)
    weight:  (C_out, C_in) or (C_out, C_in, 1, 1)  -- PyTorch conv weight layout
    bias:    (C_out,) or None
    returns  (N, C_out) in x.dtype  (accumulation is always f32)
    """
    if weight.ndim == 4:
        weight = weight.reshape(weight.shape[0], weight.shape[1])
    n, c_in = x.shape
    c_out, c_in_w = weight.shape
    assert c_in == c_in_w, "weight / input channel mismatch"

    out_dtype = x.dtype
    if compute_dtype is None:
        compute_dtype = x.dtype

    # ---- tile selection ----------------------------------------------------
    # Sublane minimum for tm must satisfy both the x block (compute dtype) and
    # the output block (out dtype); lane dims (tk for x, tn for w/out) are 128.
    sub_m = max(_sublane(compute_dtype), _sublane(out_dtype))
    tm, n_p = _pick_tile(n, tm_pref, sub_m)
    tn, co_p = _pick_tile(c_out, tn_pref, 128)
    tk, ci_p = _pick_tile(c_in, tk_pref, 128)

    # v7x has 2 TensorCores: if both parallel axes would have a single block,
    # split C_out in two (only when it splits cleanly into 128-multiples).
    if (n_p // tm) * (co_p // tn) == 1 and co_p >= 256 and co_p % 256 == 0:
        tn = co_p // 2

    grid = (n_p // tm, co_p // tn, ci_p // tk)

    # ---- one-time layout / padding / cast (fused by XLA; constant-folds for
    # static params under jit) -----------------------------------------------
    w_io = jnp.transpose(weight)            # (C_in, C_out): NN layout, no in-kernel transpose
    x_p = x
    if (n_p, ci_p) != (n, c_in) or x.dtype != jnp.dtype(compute_dtype):
        # K zero-padding contributes 0 to the reduction; extra M rows sliced off below.
        x_p = jnp.pad(x, ((0, n_p - n), (0, ci_p - c_in))).astype(compute_dtype)
    w_p = w_io
    if (ci_p, co_p) != (c_in, c_out) or w_io.dtype != jnp.dtype(compute_dtype):
        w_p = jnp.pad(w_io, ((0, ci_p - c_in), (0, co_p - c_out))).astype(compute_dtype)

    has_bias = bias is not None
    args = [x_p, w_p]
    in_specs = [
        pl.BlockSpec((tm, tk), lambda i, j, k: (i, k)),   # x tile
        pl.BlockSpec((tk, tn), lambda i, j, k: (k, j)),   # weight tile (C_in, C_out)
    ]
    if has_bias:
        b_p = bias.astype(jnp.float32).reshape(1, c_out)
        if co_p != c_out:
            b_p = jnp.pad(b_p, ((0, 0), (0, co_p - c_out)))
        args.append(b_p)
        in_specs.append(pl.BlockSpec((1, tn), lambda i, j, k: (0, j)))  # bias (C_out tile j)

    # f32 output -> accumulate directly in the output block; otherwise f32 scratch.
    use_scratch = jnp.dtype(out_dtype) != jnp.dtype(jnp.float32)
    scratch_shapes = [pltpu.VMEM((tm, tn), jnp.float32)] if use_scratch else []

    if vmem_limit_bytes is None:
        vmem_limit_bytes = _default_vmem_limit_bytes()

    flops = 2 * n_p * co_p * ci_p
    bytes_accessed = (
        x_p.size * x_p.dtype.itemsize
        + w_p.size * w_p.dtype.itemsize * (n_p // tm)      # weight re-read per M tile
        + n_p * co_p * jnp.dtype(out_dtype).itemsize
    )

    kernel = functools.partial(
        _matmul_kernel, has_bias=has_bias, use_scratch=use_scratch
    )

    out = pl.pallas_call(
        kernel,
        out_shape=jax.ShapeDtypeStruct((n_p, co_p), out_dtype),
        grid_spec=pltpu.PrefetchScalarGridSpec(
            num_scalar_prefetch=0,
            grid=grid,
            in_specs=in_specs,
            out_specs=pl.BlockSpec((tm, tn), lambda i, j, k: (i, j)),
            scratch_shapes=scratch_shapes,
        ),
        compiler_params=pltpu.CompilerParams(
            dimension_semantics=("parallel", "parallel", "arbitrary"),
            vmem_limit_bytes=vmem_limit_bytes,
        ),
        cost_estimate=pl.CostEstimate(
            flops=flops, transcendentals=0, bytes_accessed=bytes_accessed
        ),
    )(*args)

    if (n_p, co_p) != (n, c_out):
        out = out[:n, :c_out]
    return out


if __name__ == "__main__":
    # Small shapes consistent with the module's forward (x is (batch, in_channels)).
    batch, in_channels, out_channels = 8, 32, 64

    key = jax.random.PRNGKey(0)
    kx, kw, kb = jax.random.split(key, 3)

    x = jax.random.normal(kx, (batch, in_channels), dtype=jnp.float32)
    # Parameters with nn.Conv2d(in, out, kernel_size=1) weight layout (out, in, 1, 1).
    w = jax.random.normal(kw, (out_channels, in_channels, 1, 1), dtype=jnp.float32) * 0.05
    b = jax.random.normal(kb, (out_channels,), dtype=jnp.float32) * 0.05

    w2d = w.reshape(out_channels, in_channels)
    y_ref = jnp.dot(x, w2d.T, precision=jax.lax.Precision.HIGHEST) + b

    # f32 compute path (tight check).
    y_f32 = conv1x1(x, w, b, compute_dtype=jnp.float32)
    jax.block_until_ready(y_f32)
    assert y_f32.shape == (batch, out_channels)
    assert jnp.allclose(y_f32, y_ref, atol=2e-2, rtol=2e-2)

    # Default bf16-compute / f32-accumulate path (perf config; looser tolerance).
    y_bf16 = conv1x1(x, w, b)
    jax.block_until_ready(y_bf16)
    assert y_bf16.shape == (batch, out_channels)
    assert jnp.allclose(y_bf16, y_ref, atol=5e-2, rtol=5e-2)

    # No-bias specialization (skips bias input / DMA / epilogue add).
    y_nb = conv1x1(x, w, None, compute_dtype=jnp.float32)
    jax.block_until_ready(y_nb)
    y_nb_ref = jnp.dot(x, w2d.T, precision=jax.lax.Precision.HIGHEST)
    assert jnp.allclose(y_nb, y_nb_ref, atol=2e-2, rtol=2e-2)

    print("KERNEL_OK")
</pallas_src>

<mosaic_0001>
module attributes {stable_mosaic.version = 11 : i64} {
  func.func @_matmul_kernel(%arg0: i32, %arg1: i32, %arg2: i32, %arg3: memref<8x128xf32, #tpu.memory_space<vmem>>, %arg4: memref<128x128xf32, #tpu.memory_space<vmem>>, %arg5: memref<1x128xf32, #tpu.memory_space<vmem>>, %arg6: memref<8x128xf32, #tpu.memory_space<vmem>>) attributes {dimension_semantics = [#tpu.dimension_semantics<parallel>, #tpu.dimension_semantics<parallel>, #tpu.dimension_semantics<arbitrary>], iteration_bounds = array<i64: 1, 1, 1>, scalar_prefetch = 0 : i64, scratch_operands = 0 : i64, tpu.core_type = #tpu.core_type<tc>, window_params = [{transform_indices = @transform_0, window_bounds = array<i64: 8, 128>}, {transform_indices = @transform_1, window_bounds = array<i64: 128, 128>}, {transform_indices = @transform_2, window_bounds = array<i64: 1, 128>}, {transform_indices = @transform_3, window_bounds = array<i64: 8, 128>}]} {
    %c0_i32 = arith.constant 0 : i32
    %0 = arith.cmpi eq, %arg2, %c0_i32 : i32
    %1 = arith.extui %0 : i1 to i32
    %c0_i32_0 = arith.constant 0 : i32
    %2 = arith.cmpi ne, %1, %c0_i32_0 : i32
    scf.if %2 {
      %cst_10 = arith.constant 0.000000e+00 : f32
      %12 = vector.broadcast %cst_10 : f32 to vector<8x128xf32>
      %c0_11 = arith.constant 0 : index
      %c0_12 = arith.constant 0 : index
      %13 = vector.load %arg6[%c0_11, %c0_12] : memref<8x128xf32, #tpu.memory_space<vmem>>, vector<8x128xf32>
      tpu.vector_store %arg6[%c0_11, %c0_12], %12 {strides = array<i32>} : memref<8x128xf32, #tpu.memory_space<vmem>>, vector<8x128xf32>,
    } else {
    }
    %c0 = arith.constant 0 : index
    %c0_1 = arith.constant 0 : index
    %3 = vector.load %arg6[%c0, %c0_1] : memref<8x128xf32, #tpu.memory_space<vmem>>, vector<8x128xf32>
    %c0_2 = arith.constant 0 : index
    %c0_3 = arith.constant 0 : index
    %4 = vector.load %arg3[%c0_2, %c0_3] : memref<8x128xf32, #tpu.memory_space<vmem>>, vector<8x128xf32>
    %c0_4 = arith.constant 0 : index
    %c0_5 = arith.constant 0 : index
    %5 = vector.load %arg4[%c0_4, %c0_5] : memref<128x128xf32, #tpu.memory_space<vmem>>, vector<128x128xf32>
    %cst = arith.constant dense<0.000000e+00> : vector<8x128xf32>
    %6 = tpu.matmul %4, %5, %cst {dimension_numbers = #tpu.dot_dimension_numbers<[1], [0], [0], [1], [0, 0, 1, 1], [], []>} : vector<8x128xf32>, vector<128x128xf32>, vector<8x128xf32> -> vector<8x128xf32>
    %7 = arith.addf %3, %6 : vector<8x128xf32>
    %c0_6 = arith.constant 0 : index
    %c0_7 = arith.constant 0 : index
    %8 = vector.load %arg6[%c0_6, %c0_7] : memref<8x128xf32, #tpu.memory_space<vmem>>, vector<8x128xf32>
    tpu.vector_store %arg6[%c0_6, %c0_7], %7 {strides = array<i32>} : memref<8x128xf32, #tpu.memory_space<vmem>>, vector<8x128xf32>,
    %c0_i32_8 = arith.constant 0 : i32
    %9 = arith.cmpi eq, %arg2, %c0_i32_8 : i32
    %10 = arith.extui %9 : i1 to i32
    %c0_i32_9 = arith.constant 0 : i32
    %11 = arith.cmpi ne, %10, %c0_i32_9 : i32
    scf.if %11 {
      %c0_10 = arith.constant 0 : index
      %c0_11 = arith.constant 0 : index
      %12 = vector.load %arg6[%c0_10, %c0_11] : memref<8x128xf32, #tpu.memory_space<vmem>>, vector<8x128xf32>
      %c0_12 = arith.constant 0 : index
      %c0_13 = arith.constant 0 : index
      %13 = vector.load %arg5[%c0_12, %c0_13] : memref<1x128xf32, #tpu.memory_space<vmem>>, vector<1x128xf32>
      %14 = vector.broadcast %13 : vector<1x128xf32> to vector<8x128xf32>
      %15 = arith.addf %12, %14 : vector<8x128xf32>
      %c0_14 = arith.constant 0 : index
      %c0_15 = arith.constant 0 : index
      %16 = vector.load %arg6[%c0_14, %c0_15] : memref<8x128xf32, #tpu.memory_space<vmem>>, vector<8x128xf32>
      tpu.vector_store %arg6[%c0_14, %c0_15], %15 {strides = array<i32>} : memref<8x128xf32, #tpu.memory_space<vmem>>, vector<8x128xf32>,
    } else {
    }
    return
  }
  func.func @transform_0(%arg0: i32, %arg1: i32, %arg2: i32) -> (i32, i32) {
    %c0_i32 = arith.constant 0 : i32
    return %arg0, %arg2 : i32, i32
  }
  func.func @transform_1(%arg0: i32, %arg1: i32, %arg2: i32) -> (i32, i32) {
    %c0_i32 = arith.constant 0 : i32
    return %arg2, %arg1 : i32, i32
  }
  func.func @transform_2(%arg0: i32, %arg1: i32, %arg2: i32) -> (i32, i32) {
    %c0_i32 = arith.constant 0 : i32
    %c0_i32_0 = arith.constant 0 : i32
    return %c0_i32, %arg1 : i32, i32
  }
  func.func @transform_3(%arg0: i32, %arg1: i32, %arg2: i32) -> (i32, i32) {
    %c0_i32 = arith.constant 0 : i32
    return %arg0, %arg1 : i32, i32
  }
}

</mosaic_0001>

<bundles_post_ra>
// kernel: tpu_custom_call.1
= control target key start
LH: loop header
LB: loop body
LE: loop exit
PB: predicated region body
PF: predicated region fallthrough
CT: control target
= control target key end

     0   :  { %8 = vsyncpa [#allocation3], 0  ;;  %s433_s0 = inlined_call_operand.hbm [shape: f32[8,128], index: 0, kind: input, shape index: {}]   ;;  %s434_s1 = inlined_call_operand.hbm [shape: f32[128,128], index: 1, kind: input, shape index: {}]   ;;  %s435_s2 = inlined_call_operand.hbm [shape: f32[1,128], index: 2, kind: input, shape index: {}]   ;;  %s436_s3 = inlined_call_operand.hbm [shape: f32[8,128], index: 3, kind: output, shape index: {}]  }
   0x1   :  { %9 = vsyncpa [#allocation6], 0 }
   0x2   :  { %10 = vsyncpa [#allocation4], 0  ;;  %s356_s12 = smov [#allocation5]   ;;  %s262_s16 = scalar_lea.hbm %s434_s1, 2048 }
   0x3   :  { %s26_s13 = sshll.u32 %s356_s12, 4  ;;  %p263_p0 = scmp.ne.s32.totalorder %s434_s1, %s262_s16  ;;  %s27_s13 = int_to_ptr.vmem [resolvable:$true] %s26_s13 }
   0x4   :  { %p266_p1 = scmp.lt.u32.totalorder %s262_s16, %s434_s1 }
   0x6   :  { %p268_p2 = pnand %p266_p1, %p263_p0 }
   0x8   :  { %271 = shalt.err (!%p268_p2)
}
   0x9   :  { %s272_s21 = scalar_lea.vmem %s27_s13, 2048  ;;  %p277_p4 = scmp.lt.s32.totalorder %s27_s13, %s27_s13 }
   0xa   :  { %p273_p3 = scmp.ne.s32.totalorder %s27_s13, %s272_s21  ;;  %p278_p5 = scmp.lt.s32.totalorder %s272_s21, %s272_s21 }
   0xc   :  { %p279_p6 = por %p278_p5, %p277_p4 }
   0xe   :  { %p280_p7 = pnand %p279_p6, %p273_p3 }
  0x10   :  { %283 = shalt.err (!%p280_p7)
}
  0x11   :  { %s357_s22 = smov 128   ;;  %s358_s23 = smov 8  }
  0x12   :  { %32 = dma.hbm_to_vmem [thread:$0]  %s434_s1, 2048, %s27_s13, [#allocation6], %s357_s22, %s357_s22, %s358_s23  }
  0x13   :  { %s359_s26 = smov [#allocation2]   ;;  %s360_s28 = smov [#allocation7]  }
  0x14   :  { %s17_s27 = sshll.u32 %s359_s26, 4  ;;  %s39_s29 = sshll.u32 %s360_s28, 4  ;;  %s18_s27 = int_to_ptr.vmem [resolvable:$true] %s17_s27  ;;  %s40_s29 = int_to_ptr.vmem [resolvable:$true] %s39_s29 }
  0x15   :  { %s284_s5 = scalar_lea.hbm %s433_s0, 128 }
  0x16   :  { %p285_p8 = scmp.ne.s32.totalorder %s433_s0, %s284_s5  ;;  %p288_p9 = scmp.lt.u32.totalorder %s284_s5, %s433_s0 }
  0x18   :  { %p290_p10 = pnand %p288_p9, %p285_p8 }
  0x1a   :  { %293 = shalt.err (!%p290_p10)
}
  0x1b   :  { %s294_s1 = scalar_lea.vmem %s18_s27, 128  ;;  %p299_p12 = scmp.lt.s32.totalorder %s18_s27, %s18_s27 }
  0x1c   :  { %p295_p11 = scmp.ne.s32.totalorder %s18_s27, %s294_s1  ;;  %p300_p13 = scmp.lt.s32.totalorder %s294_s1, %s294_s1 }
  0x1e   :  { %p301_p0 = por %p300_p13, %p299_p12 }
  0x20   :  { %p302_p1 = pnand %p301_p0, %p295_p11 }
  0x22   :  { %305 = shalt.err (!%p302_p1)
}
  0x23   :  { %20 = dma.hbm_to_vmem [thread:$0]  %s433_s0, 128, %s18_s27, [#allocation3]  }
  0x24   :  { %s306_s14 = scalar_lea.hbm %s435_s2, 16 }
  0x25   :  { %p307_p2 = scmp.ne.s32.totalorder %s435_s2, %s306_s14  ;;  %p310_p3 = scmp.lt.u32.totalorder %s306_s14, %s435_s2 }
  0x27   :  { %p312_p4 = pnand %p310_p3, %p307_p2 }
  0x29   :  { %315 = shalt.err (!%p312_p4)
}
  0x2a   :  { %s316_s19 = scalar_lea.vmem %s40_s29, 16  ;;  %s320_s20 = scalar_lea.vmem %s40_s29, 32 }
  0x2b   :  { %p317_p5 = scmp.ne.s32.totalorder %s40_s29, %s316_s19  ;;  %p321_p6 = scmp.lt.s32.totalorder %s40_s29, %s40_s29 }
  0x2c   :  { %p322_p7 = scmp.lt.s32.totalorder %s320_s20, %s316_s19 }
  0x2e   :  { %p323_p8 = por %p322_p7, %p321_p6 }
  0x30   :  { %p324_p9 = pnand %p323_p8, %p317_p5 }
  0x32   :  { %327 = shalt.err (!%p324_p9)
}
  0x33   :  { %42 = dma.hbm_to_vmem [thread:$0]  %s435_s2, 16, %s40_s29, [#allocation6]  }
  0x34   :  { %350 = dma.done.wait [#allocation3], 128  }
  0x35   :  { %351 = vsyncadd [#allocation3], 4294967168 }
  0x36   :  { %352 = dma.done.wait [#allocation6], 2064  }
  0x37   :  { %353 = vsyncadd [#allocation6], 4294965232  ;;  %v361_v0 = vmov 0.0|0.0   ;;  %vm362_vm0 = vmmov 0   ;;  %v363_v1 = vmov 0.0   ;;  %v59_v2 = vld [vmem:[#allocation5] sm:$0xff] }
  0x38   :  { %229 = vmatprep.subr.bf16.mxu0 %v361_v0  ;;  %226 = vmatprep.mubr.msk.f32.mxu0 %vm362_vm0, %v363_v1  ;;  %v60_v3 = vld [vmem:[#allocation5 + $0x8] sm:$0xff]  ;;  %v61_v4 = vld [vmem:[#allocation5 + $0x10] sm:$0xff]  ;;  %v62_v6 = vld [vmem:[#allocation5 + $0x18] sm:$0xff]  ;;  %s364_s2 = smov [#allocation8]  }
  0x39   :  { %v230_v5 = vpack.c.bf16 %v60_v3, %v59_v2  ;;  %v233_v7 = vpack.c.bf16 %v62_v6, %v61_v4  ;;  %v63_v8 = vld [vmem:[#allocation5 + $0x20] sm:$0xff]  ;;  %v64_v9 = vld [vmem:[#allocation5 + $0x28] sm:$0xff]  ;;  %v65_v11 = vld [vmem:[#allocation5 + $0x30] sm:$0xff]  ;;  %s166_s22 = sshll.u32 %s364_s2, 4  ;;  %s167_s22 = int_to_ptr.vmem [resolvable:$true] %s166_s22 }
  0x3a   :  { %v236_v10 = vpack.c.bf16 %v64_v9, %v63_v8  ;;  %v66_v12 = vld [vmem:[#allocation5 + $0x38] sm:$0xff]  ;;  %v67_v14 = vld [vmem:[#allocation5 + $0x40] sm:$0xff]  ;;  %v68_v15 = vld [vmem:[#allocation5 + $0x48] sm:$0xff]  ;;  %s328_s23 = scalar_lea.vmem %s167_s22, 128  ;;  %p333_p11 = scmp.lt.s32.totalorder %s167_s22, %s167_s22 }
  0x3b   :  { %231 = vmatpush3.bf16.msra.mxu0 %v230_v5  ;;  %v239_v13 = vpack.c.bf16 %v66_v12, %v65_v11  ;;  %v242_v16 = vpack.c.bf16 %v68_v15, %v67_v14  ;;  %v69_v17 = vld [vmem:[#allocation5 + $0x50] sm:$0xff]  ;;  %v70_v18 = vld [vmem:[#allocation5 + $0x58] sm:$0xff]  ;;  %v71_v20 = vld [vmem:[#allocation5 + $0x60] sm:$0xff]  ;;  %p329_p10 = scmp.ne.s32.totalorder %s167_s22, %s328_s23  ;;  %p334_p12 = scmp.lt.s32.totalorder %s328_s23, %s328_s23 }
  0x3c   :  { %232 = vmatprep.subr.bf16.mxu0 %v361_v0  ;;  %v245_v19 = vpack.c.bf16 %v70_v18, %v69_v17  ;;  %v72_v21 = vld [vmem:[#allocation5 + $0x68] sm:$0xff]  ;;  %v73_v23 = vld [vmem:[#allocation5 + $0x70] sm:$0xff]  ;;  %v74_v24 = vld [vmem:[#allocation5 + $0x78] sm:$0xff] }
  0x3d   :  { %v248_v22 = vpack.c.bf16 %v72_v21, %v71_v20  ;;  %v251_v25 = vpack.c.bf16 %v74_v24, %v73_v23  ;;  %v58_v26 = vld [vmem:[#allocation2] sm:$0xff]  ;;  %v176_v28 = vld [vmem:[#allocation7] ss:$0 sm:$0xff]  ;;  %p335_p13 = por %p334_p12, %p333_p11 }
  0x3f   :  { %234 = vmatpush3.bf16.msra.mxu0 %v233_v7  ;;  %p336_p0 = pnand %p335_p13, %p329_p10 }
  0x40   :  { %235 = vmatprep.subr.bf16.mxu0 %v361_v0 }
  0x43   :  { %237 = vmatpush3.bf16.msra.mxu0 %v236_v10 }
  0x44   :  { %238 = vmatprep.subr.bf16.mxu0 %v361_v0 }
  0x47   :  { %240 = vmatpush3.bf16.msra.mxu0 %v239_v13 }
  0x48   :  { %241 = vmatprep.subr.bf16.mxu0 %v361_v0 }
  0x4b   :  { %243 = vmatpush3.bf16.msra.mxu0 %v242_v16 }
  0x4c   :  { %244 = vmatprep.subr.bf16.mxu0 %v361_v0 }
  0x4f   :  { %246 = vmatpush3.bf16.msra.mxu0 %v245_v19 }
  0x50   :  { %247 = vmatprep.subr.bf16.mxu0 %v361_v0 }
  0x53   :  { %249 = vmatpush3.bf16.msra.mxu0 %v248_v22 }
  0x54   :  { %250 = vmatprep.subr.bf16.mxu0 %v361_v0 }
  0x57   :  { %252 = vmatpush3.bf16.msra.mxu0 %v251_v25 }
  0x5a   :  { %227 = vmatmul.mubr.f32.vlgmr.msra.gmra.mrb[0].mxu0 %v58_v26 }
 0x12d   :  { %v141_v27 = vpop.f32.mrb[0].mxu0 }
 0x12e   :  { %v228_v29 = vpop.f32.mrb[1].mxu0  ;;  %v158_v30 = vadd.f32 %v176_v28, %v141_v27 }
 0x130   :  { %159 = vst [vmem:[#allocation8] sm:$0xff] %v158_v30 }
 0x131   :  { %339 = shalt.err (!%p336_p0)
}
 0x132   :  { %s340_s26 = scalar_lea.hbm %s436_s3, 128 }
 0x133   :  { %p341_p1 = scmp.ne.s32.totalorder %s436_s3, %s340_s26  ;;  %p344_p2 = scmp.lt.u32.totalorder %s340_s26, %s436_s3 }
 0x135   :  { %p346_p3 = pnand %p344_p2, %p341_p1 }
 0x137   :  { %349 = shalt.err (!%p346_p3)
}
 0x138   :  { %169 = dma.vmem_to_hbm [thread:$0]  %s167_s22, 128, %s436_s3, [#allocation4]  }
 0x139   :  { %354 = dma.done.wait [#allocation4], 128  }
 0x13a   :  { %355 = vsyncadd [#allocation4], 4294967168 }
 0x13b   :  { %173 = vsyncpa [#allocation3], 1 }
 0x13c   :  { %174 = vsyncpa [#allocation6], 1 }
 0x13d   :  { %175 = vsyncpa [#allocation4], 1 }

</bundles_post_ra>
